<compile_context>
chip_gen: v7x
topology: tpu7x:2x2x1
jax: 0.10.0
libtpu: 0.0.40
codegen_flags: <defaults>
</compile_context>

<pallas_src>
import functools

import numpy as np
import jax
import jax.numpy as jnp
from jax.experimental import pallas as pl
from jax.experimental.pallas import tpu as pltpu


# --------------------------------------------------------------------------- #
# Kernel
# --------------------------------------------------------------------------- #
def _truncated_loss_kernel(logits_ref, tgt_ref, w_ref, out_ref, *,
                           q, lqk, inv_q, rows_total, block_rows, need_mask):
    i = pl.program_id(0)

    x_raw = logits_ref[...]                               # (bb, C) native dtype
    bb, C = x_raw.shape

    # f32 only for the streamed softmax denominator (single upcast on load).
    x = x_raw.astype(jnp.float32)                          # (bb, C)
    m = jnp.max(x, axis=1, keepdims=True)                  # (bb, 1)
    denom = jnp.sum(jnp.exp(x - m), axis=1, keepdims=True) # (bb, 1)

    # Gather the target logit with a one-hot masked sum on the raw tile
    # (exactly one element per row is selected, so the sum is exact).
    col = jax.lax.broadcasted_iota(jnp.int32, (1, C), 1)   # (1, C)
    tgt = tgt_ref[...]                                     # (bb, 1) int32
    onehot = col == tgt                                    # (bb, C) via broadcast
    logit_t = jnp.sum(jnp.where(onehot, x_raw, jnp.zeros_like(x_raw)),
                      axis=1, keepdims=True).astype(jnp.float32)    # (bb, 1)

    yg = jnp.exp(logit_t - m) / denom                      # p[target], (bb, 1)
    yg = jnp.maximum(yg, 1e-30)                            # guard log(0)
    yg_q = jnp.exp(q * jnp.log(yg))                        # Yg ** q (EUP ops)

    w = w_ref[...].astype(jnp.float32)                     # (bb, 1)
    row_loss = ((1.0 - yg_q) * inv_q - lqk) * w            # (bb, 1)

    if need_mask:
        # Ragged last block: rows >= rows_total hold garbage logits / padded
        # targets; select() drops them (NaN in the dead branch cannot leak).
        row = i * block_rows + jax.lax.broadcasted_iota(jnp.int32, (bb, 1), 0)
        row_loss = jnp.where(row < rows_total, row_loss, 0.0)

    partial = jnp.sum(row_loss, axis=0, keepdims=True)     # (1, 1)
    # Per-block partial sum written to an (8,128)-aligned block -> no carried
    # accumulator, batch axis can be "parallel" (both TCs on v7x).
    out_ref[...] = jnp.broadcast_to(partial.reshape(1, 1, 1), out_ref.shape)


# --------------------------------------------------------------------------- #
# Tiling plan
# --------------------------------------------------------------------------- #
def _vmem_capacity_bytes():
    try:
        cap = int(getattr(pltpu.get_tpu_info(), "vmem_capacity_bytes", 0))
        if cap > 0:
            return cap
    except Exception:
        pass
    return 64 << 20     # conservative: v7x per-TC physical VMEM


def _plan(batch, num_classes, itemsize, block_rows=None):
    """Returns (block_rows, grid, vmem_limit_bytes)."""
    vmem_cap = _vmem_capacity_bytes()
    vmem_limit = min(int(vmem_cap * 0.75), 100 << 20)

    if block_rows is None:
        # DMA-efficiency target: ~4 MiB of logits per block ...
        target_bytes = 4 << 20
        bb = max(8, target_bytes // max(1, num_classes * itemsize))
        # ... clamped by a VMEM budget that counts the double-buffered,
        # lane-padded inputs (logits + (bb,1) tgt/w) and f32 temporaries.
        c_pad = ((num_classes + 127) // 128) * 128
        per_row = 2 * (c_pad * itemsize + 2 * 128 * 4) + 4 * c_pad * 4
        budget = vmem_limit // 2
        bb = min(bb, max(8, budget // per_row))
    else:
        bb = max(8, int(block_rows))

    if bb >= batch:
        return batch, 1, vmem_limit            # single resident block

    mult = 16 if bb >= 16 else 8                # sublane rule / bf16 packing
    bb = max(8, (bb // mult) * mult)
    return bb, pl.cdiv(batch, bb), vmem_limit


# --------------------------------------------------------------------------- #
# Forward
# --------------------------------------------------------------------------- #
@functools.partial(jax.jit, static_argnames=("q", "k", "block_rows"))
def _truncated_loss_fwd(logits, targets, indexes, weight, *, q, k,
                        block_rows=None):
    B, C = logits.shape
    itemsize = jnp.dtype(logits.dtype).itemsize   # keep bf16 inputs bf16
    bb, grid, vmem_limit = _plan(B, C, itemsize, block_rows)

    w_idx = jnp.take(weight, indexes, axis=0).astype(jnp.float32).reshape(B, 1)
    tgt2d = targets.astype(jnp.int32).reshape(B, 1)

    Bp = bb * grid
    if Bp != B:
        # Pad only the tiny per-sample arrays; logits stay unpadded (the
        # ragged last block is masked in-kernel), avoiding an extra HBM
        # read+write of the dominant input.
        pad = Bp - B
        tgt2d = jnp.pad(tgt2d, ((0, pad), (0, 0)))
        w_idx = jnp.pad(w_idx, ((0, pad), (0, 0)))

    qf, kf = float(q), float(k)
    kernel = functools.partial(
        _truncated_loss_kernel,
        q=qf,
        lqk=(1.0 - kf ** qf) / qf,
        inv_q=1.0 / qf,
        rows_total=B,
        block_rows=bb,
        need_mask=(Bp != B),
    )

    partials = pl.pallas_call(
        kernel,
        out_shape=jax.ShapeDtypeStruct((grid, 8, 128), jnp.float32),
        grid_spec=pltpu.PrefetchScalarGridSpec(
            num_scalar_prefetch=0,
            grid=(grid,),
            in_specs=[
                pl.BlockSpec((bb, C), lambda i: (i, 0)),   # logits
                pl.BlockSpec((bb, 1), lambda i: (i, 0)),   # target class ids
                pl.BlockSpec((bb, 1), lambda i: (i, 0)),   # gathered weights
            ],
            out_specs=pl.BlockSpec((1, 8, 128), lambda i: (i, 0, 0)),
        ),
        compiler_params=pltpu.CompilerParams(
            dimension_semantics=("parallel",),             # independent blocks
            vmem_limit_bytes=int(vmem_limit),
        ),
    )(logits, tgt2d, w_idx)

    # Final reduction over a handful of per-block partials + mean over true B.
    return jnp.sum(partials[:, 0, 0]) * (1.0 / B)


# --------------------------------------------------------------------------- #
# State update (not the forward hot path)
# --------------------------------------------------------------------------- #
@functools.partial(jax.jit, static_argnames=("q", "k"), donate_argnums=(3,))
def _update_weight(logits, targets, indexes, weight, *, q, k):
    # TODO(synk): could be a tiny Pallas scatter with input_output_aliases if
    # the weight table ever becomes the bottleneck; a donated XLA scatter is
    # already in-place and off the forward hot path.
    p = jax.nn.softmax(logits.astype(jnp.float32), axis=1)
    yg = jnp.take_along_axis(p, targets[:, None].astype(jnp.int32), axis=1)
    lq = (1.0 - yg ** q) / q
    lqk = (1.0 - k ** q) / q
    cond = (lqk > lq).astype(weight.dtype)                 # (B, 1)
    return weight.at[indexes].set(cond)


class TruncatedLossPallas:
    """JAX/Pallas port of the PyTorch `TruncatedLoss` module."""

    def __init__(self, q=0.7, k=0.5, trainset_size=50000):
        self.q = float(q)
        self.k = float(k)
        self.weight = jnp.ones((trainset_size, 1), dtype=jnp.float32)

    def __call__(self, logits, targets, indexes):
        return _truncated_loss_fwd(logits, targets, indexes, self.weight,
                                   q=self.q, k=self.k)

    def update_weight(self, logits, targets, indexes):
        self.weight = _update_weight(logits, targets, indexes, self.weight,
                                     q=self.q, k=self.k)


# --------------------------------------------------------------------------- #
# Reference + self-test
# --------------------------------------------------------------------------- #
def _reference_loss(logits, targets, indexes, weight, q, k):
    p = jax.nn.softmax(logits.astype(jnp.float32), axis=1)
    yg = jnp.take_along_axis(p, targets[:, None].astype(jnp.int32), axis=1)
    w = weight[indexes]
    loss = (1.0 - yg ** q) / q * w - (1.0 - k ** q) / q * w
    return jnp.mean(loss)


if __name__ == "__main__":
    trainset_size = 64
    num_classes = 10
    q, k = 0.7, 0.5

    key = jax.random.PRNGKey(0)
    module = TruncatedLossPallas(q=q, k=k, trainset_size=trainset_size)

    # ---- test 1: small batch, single resident block --------------------- #
    batch = 8
    k1, k2, k3, key = jax.random.split(key, 4)
    logits = jax.random.normal(k1, (batch, num_classes), dtype=jnp.float32)
    targets = jax.random.randint(k2, (batch,), 0, num_classes, dtype=jnp.int32)
    indexes = jax.random.randint(k3, (batch,), 0, trainset_size, dtype=jnp.int32)

    loss1 = jax.block_until_ready(module(logits, targets, indexes))
    ref1 = jax.block_until_ready(
        _reference_loss(logits, targets, indexes, module.weight, q, k))
    assert np.allclose(np.asarray(loss1), np.asarray(ref1), rtol=1e-4, atol=1e-5), \
        f"mismatch (ones weight): pallas={float(loss1)} ref={float(ref1)}"

    # weight prune step, then forward again with the updated weights
    module.update_weight(logits, targets, indexes)
    loss2 = jax.block_until_ready(module(logits, targets, indexes))
    ref2 = jax.block_until_ready(
        _reference_loss(logits, targets, indexes, module.weight, q, k))
    assert np.allclose(np.asarray(loss2), np.asarray(ref2), rtol=1e-4, atol=1e-5), \
        f"mismatch (updated weight): pallas={float(loss2)} ref={float(ref2)}"

    # ---- test 2: ragged multi-block path (forced small block) ----------- #
    batch = 37
    k1, k2, k3, key = jax.random.split(key, 4)
    logits = jax.random.normal(k1, (batch, num_classes), dtype=jnp.float32)
    targets = jax.random.randint(k2, (batch,), 0, num_classes, dtype=jnp.int32)
    indexes = jax.random.randint(k3, (batch,), 0, trainset_size, dtype=jnp.int32)

    loss3 = jax.block_until_ready(
        _truncated_loss_fwd(logits, targets, indexes, module.weight,
                            q=q, k=k, block_rows=16))
    ref3 = jax.block_until_ready(
        _reference_loss(logits, targets, indexes, module.weight, q, k))
    assert np.allclose(np.asarray(loss3), np.asarray(ref3), rtol=1e-4, atol=1e-5), \
        f"mismatch (ragged multi-block): pallas={float(loss3)} ref={float(ref3)}"

    print("KERNEL_OK")
</pallas_src>

<mosaic_0001>
module attributes {stable_mosaic.version = 11 : i64} {
  func.func @_truncated_loss_kernel(%arg0: i32, %arg1: memref<8x10xf32, #tpu.memory_space<vmem>>, %arg2: memref<8x1xi32, #tpu.memory_space<vmem>>, %arg3: memref<8x1xf32, #tpu.memory_space<vmem>>, %arg4: memref<1x8x128xf32, #tpu.memory_space<vmem>>) attributes {dimension_semantics = [#tpu.dimension_semantics<parallel>], iteration_bounds = array<i64: 1>, scalar_prefetch = 0 : i64, scratch_operands = 0 : i64, tpu.core_type = #tpu.core_type<tc>, window_params = [{transform_indices = @transform_0, window_bounds = array<i64: 8, 10>}, {transform_indices = @transform_1, window_bounds = array<i64: 8, 1>}, {transform_indices = @transform_2, window_bounds = array<i64: 8, 1>}, {transform_indices = @transform_3, window_bounds = array<i64: 1, 8, 128>}]} {
    %c0 = arith.constant 0 : index
    %c0_0 = arith.constant 0 : index
    %0 = vector.load %arg1[%c0, %c0_0] : memref<8x10xf32, #tpu.memory_space<vmem>>, vector<8x10xf32>
    %cst = arith.constant dense<0xFF800000> : vector<8xf32>
    %1 = vector.multi_reduction <maximumf>, %0, %cst [1] : vector<8x10xf32> to vector<8xf32>
    %2 = vector.shape_cast %1 : vector<8xf32> to vector<8x1xf32>
    %3 = vector.broadcast %2 : vector<8x1xf32> to vector<8x10xf32>
    %4 = arith.subf %0, %3 : vector<8x10xf32>
    %5 = math.exp %4 : vector<8x10xf32>
    %cst_1 = arith.constant dense<0.000000e+00> : vector<8xf32>
    %6 = vector.multi_reduction <add>, %5, %cst_1 [1] : vector<8x10xf32> to vector<8xf32>
    %7 = vector.shape_cast %6 : vector<8xf32> to vector<8x1xf32>
    %8 = tpu.iota {dimensions = array<i32: 1>} : vector<1x10xi32>
    %c0_2 = arith.constant 0 : index
    %c0_3 = arith.constant 0 : index
    %9 = vector.load %arg2[%c0_2, %c0_3] : memref<8x1xi32, #tpu.memory_space<vmem>>, vector<8x1xi32>
    %10 = vector.broadcast %8 : vector<1x10xi32> to vector<8x10xi32>
    %11 = vector.broadcast %9 : vector<8x1xi32> to vector<8x10xi32>
    %12 = arith.cmpi eq, %10, %11 : vector<8x10xi32>
    %cst_4 = arith.constant 0.000000e+00 : f32
    %13 = vector.broadcast %cst_4 : f32 to vector<8x10xf32>
    %14 = arith.select %12, %0, %13 : vector<8x10xi1>, vector<8x10xf32>
    %cst_5 = arith.constant dense<0.000000e+00> : vector<8xf32>
    %15 = vector.multi_reduction <add>, %14, %cst_5 [1] : vector<8x10xf32> to vector<8xf32>
    %16 = vector.shape_cast %15 : vector<8xf32> to vector<8x1xf32>
    %17 = arith.subf %16, %2 : vector<8x1xf32>
    %18 = math.exp %17 : vector<8x1xf32>
    %19 = arith.divf %18, %7 : vector<8x1xf32>
    %cst_6 = arith.constant 1.000000e-30 : f32
    %20 = vector.broadcast %cst_6 : f32 to vector<8x1xf32>
    %21 = arith.maximumf %19, %20 : vector<8x1xf32>
    %22 = math.log %21 : vector<8x1xf32>
    %cst_7 = arith.constant 0.699999988 : f32
    %23 = vector.broadcast %cst_7 : f32 to vector<8x1xf32>
    %24 = arith.mulf %23, %22 : vector<8x1xf32>
    %25 = math.exp %24 : vector<8x1xf32>
    %c0_8 = arith.constant 0 : index
    %c0_9 = arith.constant 0 : index
    %26 = vector.load %arg3[%c0_8, %c0_9] : memref<8x1xf32, #tpu.memory_space<vmem>>, vector<8x1xf32>
    %cst_10 = arith.constant 1.000000e+00 : f32
    %27 = vector.broadcast %cst_10 : f32 to vector<8x1xf32>
    %28 = arith.subf %27, %25 : vector<8x1xf32>
    %cst_11 = arith.constant 1.42857146 : f32
    %29 = vector.broadcast %cst_11 : f32 to vector<8x1xf32>
    %30 = arith.mulf %28, %29 : vector<8x1xf32>
    %cst_12 = arith.constant 0.549182534 : f32
    %31 = vector.broadcast %cst_12 : f32 to vector<8x1xf32>
    %32 = arith.subf %30, %31 : vector<8x1xf32>
    %33 = arith.mulf %32, %26 : vector<8x1xf32>
    %cst_13 = arith.constant dense<0.000000e+00> : vector<1xf32>
    %34 = vector.multi_reduction <add>, %33, %cst_13 [0] : vector<8x1xf32> to vector<1xf32>
    %35 = vector.shape_cast %34 : vector<1xf32> to vector<1x1xf32>
    %36 = vector.shape_cast %35 : vector<1x1xf32> to vector<1x1x1xf32>
    %37 = vector.shape_cast %36 : vector<1x1x1xf32> to vector<1x1x1xf32>
    %38 = vector.broadcast %37 : vector<1x1x1xf32> to vector<1x8x128xf32>
    %c0_14 = arith.constant 0 : index
    %c0_15 = arith.constant 0 : index
    %c0_16 = arith.constant 0 : index
    %39 = vector.load %arg4[%c0_14, %c0_15, %c0_16] : memref<1x8x128xf32, #tpu.memory_space<vmem>>, vector<1x8x128xf32>
    tpu.vector_store %arg4[%c0_14, %c0_15, %c0_16], %38 {strides = array<i32>} : memref<1x8x128xf32, #tpu.memory_space<vmem>>, vector<1x8x128xf32>,
    return
  }
  func.func @transform_0(%arg0: i32) -> (i32, i32) {
    %c0_i32 = arith.constant 0 : i32
    %c0_i32_0 = arith.constant 0 : i32
    return %arg0, %c0_i32 : i32, i32
  }
  func.func @transform_1(%arg0: i32) -> (i32, i32) {
    %c0_i32 = arith.constant 0 : i32
    %c0_i32_0 = arith.constant 0 : i32
    return %arg0, %c0_i32 : i32, i32
  }
  func.func @transform_2(%arg0: i32) -> (i32, i32) {
    %c0_i32 = arith.constant 0 : i32
    %c0_i32_0 = arith.constant 0 : i32
    return %arg0, %c0_i32 : i32, i32
  }
  func.func @transform_3(%arg0: i32) -> (i32, i32, i32) {
    %c0_i32 = arith.constant 0 : i32
    %c0_i32_0 = arith.constant 0 : i32
    %c0_i32_1 = arith.constant 0 : i32
    return %arg0, %c0_i32, %c0_i32_0 : i32, i32, i32
  }
}

</mosaic_0001>

<bundles_post_ra>
// kernel: _truncated_loss_fwd.1
= control target key start
LH: loop header
LB: loop body
LE: loop exit
PB: predicated region body
PF: predicated region fallthrough
CT: control target
= control target key end

     0   :  { %vm15_vm0 = vcmask 80896   ;;  %v84_v1 = vmov 0   ;;  %v25_v6 = vlaneseq  ;;  %vm52_vm2 = vcmask 7168   ;;  %s120_s0 = inlined_call_operand.vmem [shape: f32[8,10], index: 0, kind: input, shape index: {}]   ;;  %s121_s1 = inlined_call_operand.vmem [shape: s32[8,1], index: 1, kind: input, shape index: {}]   ;;  %s122_s2 = inlined_call_operand.vmem [shape: f32[8,1], index: 2, kind: input, shape index: {}]   ;;  %s123_s3 = inlined_call_operand.vmem [shape: f32[1,8,128], index: 3, kind: output, shape index: {}]  }
   0x1   :  { %v14_v0 = vld [vmem:[%s120_s0] sm:$0xff]  ;;  %72 = vset.pattern.permute.xlu0 %v84_v1  ;;  %73 = vset.pattern.permute.xlu1 %v84_v1 }
   0x2   :  { %v16_v2 = vsel %vm15_vm0, %v14_v0, -inf  ;;  %v27_v3 = vld [vmem:[%s121_s1] sm:$0xff]  ;;  %v26_v8 = vand.u32 127, %v25_v6 }
   0x3   :  { %17 = vmax.xlane.f32.xlu0 %v16_v2  ;;  %v47_v29 = vld [vmem:[%s122_s2] sm:$0xff] }
  0x19   :  { %29 = vperm.xlu0 %72, %v27_v3  }
  0x90   :  { %v18_v4 = vpop.xlane.xlu0 %17 }
  0x91   :  { %v19_v5 = vsub.f32 %v14_v0, %v18_v4 }
  0x93   :  { %v20_v7 = vmul.f32 1.442695, %v19_v5 }
  0x95   :  { %74 = vpow2.f32 %v20_v7 }
  0x98   :  { %v30_v9 = vpop.permute.xlu0 %29 }
  0x99   :  { %vm31_vm1 = vcmp.eq.s32.totalorder %v26_v8, %v30_v9 }
  0x9a   :  { %v32_v10 = vsel %vm31_vm1, %v14_v0, 0.0 }
  0x9b   :  { %v33_v11 = vsel %vm15_vm0, %v32_v10, 0.0 }
  0x9c   :  { %34 = vadd.xlane.f32.xlu1 %v33_v11 }
  0x9f   :  { %v75_v12 = vpop.eup %74 }
  0xa0   :  { %v22_v13 = vsel %vm15_vm0, %v75_v12, 0.0 }
  0xa1   :  { %23 = vadd.xlane.f32.xlu1 %v22_v13 }
 0x129   :  { %v35_v14 = vpop.xlane.xlu1 %34 }
 0x12a   :  { %v36_v15 = vsub.f32 %v35_v14, %v18_v4 }
 0x12c   :  { %v37_v16 = vmul.f32 1.442695, %v36_v15 }
 0x12e   :  { %76 = vpow2.f32 %v37_v16  ;;  %v24_v17 = vpop.xlane.xlu1 %23 }
 0x12f   :  { %78 = vrcp.f32 %v24_v17 }
 0x138   :  { %v77_v18 = vpop.eup %76 }
 0x139   :  { %v79_v19 = vpop.eup %78 }
 0x13a   :  { %v40_v20 = vmul.f32 %v79_v19, %v77_v18 }
 0x13c   :  { %v41_v21 = vmax.f32 %v40_v20, 1e-30 }
 0x13e   :  { %80 = vlog2.f32 %v41_v21 }
 0x148   :  { %v81_v22 = vpop.eup %80 }
 0x149   :  { %v43_v23 = vmul.f32 0.6931472, %v81_v22 }
 0x14b   :  { %v44_v24 = vmul.f32 0.7, %v43_v23 }
 0x14d   :  { %v45_v25 = vmul.f32 1.442695, %v44_v24 }
 0x14f   :  { %82 = vpow2.f32 %v45_v25 }
 0x159   :  { %v83_v26 = vpop.eup %82 }
 0x15a   :  { %v48_v27 = vsub.f32 1.0, %v83_v26 }
 0x15c   :  { %v49_v28 = vmul.f32 1.4285715, %v48_v27 }
 0x15e   :  { %v70_v30 = vadd.f32 -0.54918253, %v49_v28 }
 0x160   :  { %v51_v31 = vmul.f32 %v70_v30, %v47_v29 }
 0x162   :  { %v53_v32 = vsel %vm52_vm2, %v51_v31, 0.0 }
 0x163   :  { %v54_v33 = vrot.slane %v53_v32, 4 }
 0x165   :  { %v55_v34 = vadd.f32 %v54_v33, %v53_v32 }
 0x167   :  { %v56_v35 = vrot.slane %v55_v34, 2 }
 0x169   :  { %v57_v36 = vadd.f32 %v56_v35, %v55_v34 }
 0x16b   :  { %v58_v37 = vrot.slane %v57_v36, 1 }
 0x16d   :  { %v59_v38 = vadd.f32 %v58_v37, %v57_v36 }
 0x16f   :  { %62 = vperm.xlu1 %73, %v59_v38  }
 0x1ee   :  { %v63_v39 = vpop.permute.xlu1 %62 }
 0x1ef   :  { %65 = vst [vmem:[%s123_s3] sm:$0xff] %v63_v39 }

</bundles_post_ra>
